<compile_context>
chip_gen: v7x
topology: tpu7x:2x2x1
jax: 0.10.0
libtpu: 0.0.40
codegen_flags: <defaults>
</compile_context>

<pallas_src>
import functools
import math

import jax
import jax.numpy as jnp
import numpy as np
from jax import lax
from jax.experimental import pallas as pl
from jax.experimental.pallas import tpu as pltpu


_TARGET_BLOCK_BYTES = 4 * 1024 * 1024   # output block cap; 2x buffers fit scoped VMEM on all gens
_MAX_PACKED_D = 1024                    # lane-packing cap (bounds vreg pressure of the recurrence)
_RESEED_STRIPES = 32                    # re-seed sin/cos every 32 8-row stripes (256 packed rows)


def _round_up(x, m):
    return ((x + m - 1) // m) * m


def _cdiv(a, b):
    return -(-a // b)


def _pe_kernel(a_ref, pos0_ref, isodd_ref, sind_ref, cosd_ref, o_ref, *,
               pack, tile_rows, reseed_stripes):
    """Fill one (tile_rows, packed_d) block of the packed sinusoidal PE table.

    Packed layout: lane l of packed row R holds pe[R*pack + l//d_model, l%d_model].
    For each lane, angle = position * A (A = div_term of the lane's column); even
    columns emit sin(angle), odd columns emit cos(angle) (selected per lane).

    The first stripe of every reseed segment is evaluated directly with jnp.sin/cos;
    the following stripes advance by the angle-addition recurrence with
    D = 8*pack*A (sin/cos of D precomputed on host in float64).
    """
    i = pl.program_id(0)
    n_stripes = tile_rows // 8
    sind = sind_ref[...]
    cosd = cosd_ref[...]
    odd = isodd_ref[...] > 0.5                      # per-lane "emit cos" mask, hoisted
    # absolute position of (packed row 0, sublane 0) of this tile; exact integer in f32
    tile_pos = (i * tile_rows).astype(jnp.float32) * jnp.float32(pack)

    for s0 in range(0, n_stripes, reseed_stripes):
        seg_len = min(reseed_stripes, n_stripes - s0)

        # ---- seed stripe: exact angle, direct sin/cos ----
        pos = tile_pos + jnp.float32(s0 * 8 * pack) + pos0_ref[...]
        angle = pos * a_ref[...]
        s = jnp.sin(angle)
        c = jnp.cos(angle)
        o_ref[pl.ds(s0 * 8, 8), :] = jnp.where(odd, c, s)

        if seg_len > 1:
            def rot_body(j, carry, s0=s0):
                s, c = carry
                s2 = s * cosd + c * sind
                c2 = c * cosd - s * sind
                start = pl.multiple_of(s0 * 8 + j * 8, 8)
                o_ref[pl.ds(start, 8), :] = jnp.where(odd, c2, s2)
                return (s2, c2)

            lax.fori_loop(1, seg_len, rot_body, (s, c))


@functools.lru_cache(maxsize=None)
def _pe_table(d_model, max_len):
    """Build the full (1, max_len, d_model) float32 PE buffer once per config."""
    d_model = int(d_model)
    max_len = int(max_len)
    assert d_model >= 2 and d_model % 2 == 0, "d_model must be even (as in the PyTorch module)"

    # ---- lane-dense layout: stored rows are always a multiple of 128 lanes ----
    if d_model % 128 == 0:
        pack, packed_d, lane_padded = 1, d_model, False
    else:
        pack = math.lcm(d_model, 128) // d_model
        if pack * d_model > _MAX_PACKED_D:
            # pad the lane axis instead of falling back to masked partial stores
            pack, packed_d, lane_padded = 1, _round_up(d_model, 128), True
        else:
            packed_d, lane_padded = pack * d_model, False

    # ---- row tiling: <=4 MiB blocks, ~4+ grid steps, minimal padded rows ----
    packed_rows = _cdiv(max_len, pack)
    rows8 = _round_up(max(packed_rows, 8), 8)
    bytes_per_row = packed_d * 4
    max_tile = max(8, min(_TARGET_BLOCK_BYTES // bytes_per_row, rows8) // 8 * 8)
    k_min = max(1, _cdiv(rows8, max_tile))
    k_pref = max(k_min, min(4, rows8 // 8))          # >=4 steps when rows allow (v7x: 2 TCs)
    best = None
    for k in range(k_pref, k_pref + 4):
        tr = min(max_tile, _round_up(_cdiv(rows8, k), 8))
        steps = _cdiv(rows8, tr)
        cand = (steps * tr, steps, tr)               # minimize padded rows, then step count
        if best is None or cand < best:
            best = cand
    padded_rows, grid_steps, tile_rows = best

    # ---- per-lane constants, replicated to 8 sublanes (natural (8,128)-tiled loads) ----
    lane = np.arange(packed_d)
    col = lane % d_model
    d_off = lane // d_model
    # div_term with the same float32 math as the PyTorch buffer construction
    div32 = np.exp(
        np.arange(0, d_model, 2, dtype=np.float32)
        * np.float32(-(math.log(10000.0) / d_model))
    ).astype(np.float32)
    a_lane = div32[col // 2]                                          # (packed_d,) f32
    delta = 8.0 * pack * a_lane.astype(np.float64)                    # per-stripe angle advance

    a8 = np.broadcast_to(a_lane, (8, packed_d)).astype(np.float32)
    pos0 = (np.arange(8, dtype=np.float64)[:, None] * pack
            + d_off[None, :]).astype(np.float32)                      # exact small integers
    isodd8 = np.broadcast_to((col % 2 == 1), (8, packed_d)).astype(np.float32)
    sind8 = np.broadcast_to(np.sin(delta), (8, packed_d)).astype(np.float32)
    cosd8 = np.broadcast_to(np.cos(delta), (8, packed_d)).astype(np.float32)

    n_elems = padded_rows * packed_d
    seeds = grid_steps * _cdiv(tile_rows // 8, _RESEED_STRIPES)
    cost = pl.CostEstimate(
        flops=8 * n_elems,
        transcendentals=2 * seeds * 8 * packed_d,
        bytes_accessed=4 * n_elems + 5 * 4 * 8 * packed_d,
    )

    kernel = functools.partial(
        _pe_kernel, pack=pack, tile_rows=tile_rows, reseed_stripes=_RESEED_STRIPES)
    const_spec = pl.BlockSpec((8, packed_d), lambda i: (0, 0))

    pe_packed = pl.pallas_call(
        kernel,
        out_shape=jax.ShapeDtypeStruct((padded_rows, packed_d), jnp.float32),
        grid_spec=pltpu.PrefetchScalarGridSpec(
            num_scalar_prefetch=0,
            grid=(grid_steps,),
            in_specs=[const_spec] * 5,
            out_specs=pl.BlockSpec((tile_rows, packed_d), lambda i: (i, 0)),
        ),
        compiler_params=pltpu.CompilerParams(dimension_semantics=("parallel",)),
        cost_estimate=cost,
    )(jnp.asarray(a8), jnp.asarray(pos0), jnp.asarray(isodd8),
      jnp.asarray(sind8), jnp.asarray(cosd8))

    # One-time unpack to the logical buffer (cached; per-call cost is a pure slice).
    if lane_padded:
        pe = pe_packed[:max_len, :d_model]
    else:
        pe = pe_packed.reshape(padded_rows * pack, d_model)[:max_len]
    return pe.reshape(1, max_len, d_model)


def positional_embedding(x, d_model, max_len=5000):
    """Equivalent of PositionalEmbedding(d_model, max_len)(x): returns pe[:, :x.shape[1]].

    Only x.shape[1] is consumed, exactly like the PyTorch forward.  The full max_len
    table is built once per (d_model, max_len) and cached (buffer semantics).
    """
    seq_len = int(x.shape[1])
    assert seq_len <= max_len, "sequence length exceeds max_len"
    return _pe_table(int(d_model), int(max_len))[:, :seq_len]


def _reference_pe(seq_len, d_model):
    """Plain-numpy replica of the PyTorch buffer construction, for checking."""
    pe = np.zeros((seq_len, d_model), dtype=np.float32)
    position = np.arange(0, seq_len, dtype=np.float32)[:, None]
    div_term = np.exp(
        np.arange(0, d_model, 2, dtype=np.float32)
        * np.float32(-(math.log(10000.0) / d_model)))
    pe[:, 0::2] = np.sin(position * div_term)
    pe[:, 1::2] = np.cos(position * div_term)
    return pe[None, :, :]


if __name__ == "__main__":
    key = jax.random.PRNGKey(0)

    # main case: d_model=32, batch=2, seq=8 (lane-packed path: 4 positions per 128 lanes)
    d_model, batch, seq = 32, 2, 8
    x = jax.random.normal(key, (batch, seq, d_model), dtype=jnp.float32)
    out = jax.block_until_ready(positional_embedding(x, d_model=d_model, max_len=5000))
    assert out.shape == (1, seq, d_model) and out.dtype == jnp.float32
    np.testing.assert_allclose(np.asarray(out), _reference_pe(seq, d_model),
                               rtol=1e-5, atol=5e-5)

    # a second seq_len reuses the cached max_len table (no new kernel launch)
    out_b = jax.block_until_ready(
        positional_embedding(jnp.zeros((batch, 21, d_model), jnp.float32), d_model=d_model))
    np.testing.assert_allclose(np.asarray(out_b), _reference_pe(21, d_model),
                               rtol=1e-5, atol=5e-5)

    # large-position behaviour (review concern): recurrence drift is bounded; tolerance
    # at pos~5000 is dominated by f32 large-angle argument rounding in sin/cos itself.
    full = jax.block_until_ready(
        positional_embedding(jnp.zeros((1, 5000, d_model), jnp.float32), d_model=d_model))
    ref_full = _reference_pe(5000, d_model)
    np.testing.assert_allclose(np.asarray(full)[:, :1280], ref_full[:, :1280],
                               rtol=0, atol=1e-3)
    np.testing.assert_allclose(np.asarray(full), ref_full, rtol=0, atol=5e-3)

    # lane-packed awkward d_model (d=24 -> 16 positions per 384 lanes)
    d2, seq2 = 24, 50
    out2 = jax.block_until_ready(
        positional_embedding(jnp.zeros((batch, seq2, d2), jnp.float32), d_model=d2, max_len=5000))
    np.testing.assert_allclose(np.asarray(out2), _reference_pe(seq2, d2),
                               rtol=1e-5, atol=5e-5)

    # lane-padded fallback (lcm(200,128)=3200 too large to pack -> pad 200 -> 256 lanes)
    d3, seq3 = 200, 10
    out3 = jax.block_until_ready(
        positional_embedding(jnp.zeros((1, seq3, d3), jnp.float32), d_model=d3, max_len=1000))
    np.testing.assert_allclose(np.asarray(out3), _reference_pe(seq3, d3),
                               rtol=1e-5, atol=5e-5)

    print("KERNEL_OK")
</pallas_src>

<mosaic_0001>
module attributes {stable_mosaic.version = 11 : i64} {
  func.func @_pe_kernel(%arg0: i32, %arg1: memref<8x128xf32, #tpu.memory_space<vmem>>, %arg2: memref<8x128xf32, #tpu.memory_space<vmem>>, %arg3: memref<8x128xf32, #tpu.memory_space<vmem>>, %arg4: memref<8x128xf32, #tpu.memory_space<vmem>>, %arg5: memref<8x128xf32, #tpu.memory_space<vmem>>, %arg6: memref<320x128xf32, #tpu.memory_space<vmem>>) attributes {dimension_semantics = [#tpu.dimension_semantics<parallel>], iteration_bounds = array<i64: 4>, scalar_prefetch = 0 : i64, scratch_operands = 0 : i64, tpu.core_type = #tpu.core_type<tc>, window_params = [{pipeline_mode = #tpu.pipeline_mode<synchronous>, transform_indices = @transform_0, window_bounds = array<i64: 8, 128>}, {pipeline_mode = #tpu.pipeline_mode<synchronous>, transform_indices = @transform_1, window_bounds = array<i64: 8, 128>}, {pipeline_mode = #tpu.pipeline_mode<synchronous>, transform_indices = @transform_2, window_bounds = array<i64: 8, 128>}, {pipeline_mode = #tpu.pipeline_mode<synchronous>, transform_indices = @transform_3, window_bounds = array<i64: 8, 128>}, {pipeline_mode = #tpu.pipeline_mode<synchronous>, transform_indices = @transform_4, window_bounds = array<i64: 8, 128>}, {transform_indices = @transform_5, window_bounds = array<i64: 320, 128>}]} {
    %c0 = arith.constant 0 : index
    %c0_0 = arith.constant 0 : index
    %0 = vector.load %arg4[%c0, %c0_0] : memref<8x128xf32, #tpu.memory_space<vmem>>, vector<8x128xf32>
    %c0_1 = arith.constant 0 : index
    %c0_2 = arith.constant 0 : index
    %1 = vector.load %arg5[%c0_1, %c0_2] : memref<8x128xf32, #tpu.memory_space<vmem>>, vector<8x128xf32>
    %c0_3 = arith.constant 0 : index
    %c0_4 = arith.constant 0 : index
    %2 = vector.load %arg3[%c0_3, %c0_4] : memref<8x128xf32, #tpu.memory_space<vmem>>, vector<8x128xf32>
    %cst = arith.constant 5.000000e-01 : f32
    %3 = vector.broadcast %cst : f32 to vector<8x128xf32>
    %4 = arith.cmpf ogt, %2, %3 : vector<8x128xf32>
    %c320_i32 = arith.constant 320 : i32
    %5 = arith.muli %arg0, %c320_i32 : i32
    %6 = arith.sitofp %5 : i32 to f32
    %cst_5 = arith.constant 4.000000e+00 : f32
    %7 = arith.mulf %6, %cst_5 : f32
    %cst_6 = arith.constant 0.000000e+00 : f32
    %8 = arith.addf %7, %cst_6 : f32
    %c0_7 = arith.constant 0 : index
    %c0_8 = arith.constant 0 : index
    %9 = vector.load %arg2[%c0_7, %c0_8] : memref<8x128xf32, #tpu.memory_space<vmem>>, vector<8x128xf32>
    %10 = vector.broadcast %8 : f32 to vector<8x128xf32>
    %11 = arith.addf %10, %9 : vector<8x128xf32>
    %c0_9 = arith.constant 0 : index
    %c0_10 = arith.constant 0 : index
    %12 = vector.load %arg1[%c0_9, %c0_10] : memref<8x128xf32, #tpu.memory_space<vmem>>, vector<8x128xf32>
    %13 = arith.mulf %11, %12 : vector<8x128xf32>
    %14 = math.sin %13 : vector<8x128xf32>
    %15 = math.cos %13 : vector<8x128xf32>
    %16 = arith.select %4, %15, %14 : vector<8x128xi1>, vector<8x128xf32>
    %c0_11 = arith.constant 0 : index
    %c0_12 = arith.constant 0 : index
    %17 = vector.load %arg6[%c0_11, %c0_12] : memref<320x128xf32, #tpu.memory_space<vmem>>, vector<8x128xf32>
    tpu.vector_store %arg6[%c0_11, %c0_12], %16 {strides = array<i32>} : memref<320x128xf32, #tpu.memory_space<vmem>>, vector<8x128xf32>,
    %c1_i32 = arith.constant 1 : i32
    %c31_i32 = arith.constant 31 : i32
    %18 = arith.addi %c1_i32, %c31_i32 : i32
    %c1_i32_13 = arith.constant 1 : i32
    %19:2 = scf.for %arg7 = %c1_i32 to %18 step %c1_i32_13 iter_args(%arg8 = %14, %arg9 = %15) -> (vector<8x128xf32>, vector<8x128xf32>)  : i32 {
      %32 = arith.mulf %arg8, %1 : vector<8x128xf32>
      %33 = arith.mulf %arg9, %0 : vector<8x128xf32>
      %34 = arith.addf %32, %33 : vector<8x128xf32>
      %35 = arith.mulf %arg9, %1 : vector<8x128xf32>
      %36 = arith.mulf %arg8, %0 : vector<8x128xf32>
      %37 = arith.subf %35, %36 : vector<8x128xf32>
      %c8_i32 = arith.constant 8 : i32
      %38 = arith.muli %arg7, %c8_i32 : i32
      %c0_i32 = arith.constant 0 : i32
      %39 = arith.addi %c0_i32, %38 : i32
      %40 = tpu.assume_multiple %39, 8 : i32
      %41 = arith.select %4, %37, %34 : vector<8x128xi1>, vector<8x128xf32>
      %42 = arith.index_cast %40 : i32 to index
      %c0_24 = arith.constant 0 : index
      %43 = vector.load %arg6[%42, %c0_24] : memref<320x128xf32, #tpu.memory_space<vmem>>, vector<8x128xf32>
      tpu.vector_store %arg6[%42, %c0_24], %41 {strides = array<i32>} : memref<320x128xf32, #tpu.memory_space<vmem>>, vector<8x128xf32>,
      scf.yield %34, %37 : vector<8x128xf32>, vector<8x128xf32>
    }
    %c31_i32_14 = arith.constant 31 : i32
    %cst_15 = arith.constant 1.024000e+03 : f32
    %20 = arith.addf %7, %cst_15 : f32
    %c0_16 = arith.constant 0 : index
    %c0_17 = arith.constant 0 : index
    %21 = vector.load %arg2[%c0_16, %c0_17] : memref<8x128xf32, #tpu.memory_space<vmem>>, vector<8x128xf32>
    %22 = vector.broadcast %20 : f32 to vector<8x128xf32>
    %23 = arith.addf %22, %21 : vector<8x128xf32>
    %c0_18 = arith.constant 0 : index
    %c0_19 = arith.constant 0 : index
    %24 = vector.load %arg1[%c0_18, %c0_19] : memref<8x128xf32, #tpu.memory_space<vmem>>, vector<8x128xf32>
    %25 = arith.mulf %23, %24 : vector<8x128xf32>
    %26 = math.sin %25 : vector<8x128xf32>
    %27 = math.cos %25 : vector<8x128xf32>
    %28 = arith.select %4, %27, %26 : vector<8x128xi1>, vector<8x128xf32>
    %c256 = arith.constant 256 : index
    %c0_20 = arith.constant 0 : index
    %29 = vector.load %arg6[%c256, %c0_20] : memref<320x128xf32, #tpu.memory_space<vmem>>, vector<8x128xf32>
    tpu.vector_store %arg6[%c256, %c0_20], %28 {strides = array<i32>} : memref<320x128xf32, #tpu.memory_space<vmem>>, vector<8x128xf32>,
    %c1_i32_21 = arith.constant 1 : i32
    %c7_i32 = arith.constant 7 : i32
    %30 = arith.addi %c1_i32_21, %c7_i32 : i32
    %c1_i32_22 = arith.constant 1 : i32
    %31:2 = scf.for %arg7 = %c1_i32_21 to %30 step %c1_i32_22 iter_args(%arg8 = %26, %arg9 = %27) -> (vector<8x128xf32>, vector<8x128xf32>)  : i32 {
      %32 = arith.mulf %arg8, %1 : vector<8x128xf32>
      %33 = arith.mulf %arg9, %0 : vector<8x128xf32>
      %34 = arith.addf %32, %33 : vector<8x128xf32>
      %35 = arith.mulf %arg9, %1 : vector<8x128xf32>
      %36 = arith.mulf %arg8, %0 : vector<8x128xf32>
      %37 = arith.subf %35, %36 : vector<8x128xf32>
      %c8_i32 = arith.constant 8 : i32
      %38 = arith.muli %arg7, %c8_i32 : i32
      %c256_i32 = arith.constant 256 : i32
      %39 = arith.addi %c256_i32, %38 : i32
      %40 = tpu.assume_multiple %39, 8 : i32
      %41 = arith.select %4, %37, %34 : vector<8x128xi1>, vector<8x128xf32>
      %42 = arith.index_cast %40 : i32 to index
      %c0_24 = arith.constant 0 : index
      %43 = vector.load %arg6[%42, %c0_24] : memref<320x128xf32, #tpu.memory_space<vmem>>, vector<8x128xf32>
      tpu.vector_store %arg6[%42, %c0_24], %41 {strides = array<i32>} : memref<320x128xf32, #tpu.memory_space<vmem>>, vector<8x128xf32>,
      scf.yield %34, %37 : vector<8x128xf32>, vector<8x128xf32>
    }
    %c7_i32_23 = arith.constant 7 : i32
    return
  }
  func.func @transform_0(%arg0: i32) -> (i32, i32) {
    %c0_i32 = arith.constant 0 : i32
    %c0_i32_0 = arith.constant 0 : i32
    %c0_i32_1 = arith.constant 0 : i32
    return %c0_i32, %c0_i32_0 : i32, i32
  }
  func.func @transform_1(%arg0: i32) -> (i32, i32) {
    %c0_i32 = arith.constant 0 : i32
    %c0_i32_0 = arith.constant 0 : i32
    %c0_i32_1 = arith.constant 0 : i32
    return %c0_i32, %c0_i32_0 : i32, i32
  }
  func.func @transform_2(%arg0: i32) -> (i32, i32) {
    %c0_i32 = arith.constant 0 : i32
    %c0_i32_0 = arith.constant 0 : i32
    %c0_i32_1 = arith.constant 0 : i32
    return %c0_i32, %c0_i32_0 : i32, i32
  }
  func.func @transform_3(%arg0: i32) -> (i32, i32) {
    %c0_i32 = arith.constant 0 : i32
    %c0_i32_0 = arith.constant 0 : i32
    %c0_i32_1 = arith.constant 0 : i32
    return %c0_i32, %c0_i32_0 : i32, i32
  }
  func.func @transform_4(%arg0: i32) -> (i32, i32) {
    %c0_i32 = arith.constant 0 : i32
    %c0_i32_0 = arith.constant 0 : i32
    %c0_i32_1 = arith.constant 0 : i32
    return %c0_i32, %c0_i32_0 : i32, i32
  }
  func.func @transform_5(%arg0: i32) -> (i32, i32) {
    %c0_i32 = arith.constant 0 : i32
    %c0_i32_0 = arith.constant 0 : i32
    return %arg0, %c0_i32 : i32, i32
  }
}

</mosaic_0001>

<bundles_post_ra>
// kernel: tpu_custom_call.1
= control target key start
LH: loop header
LB: loop body
LE: loop exit
PB: predicated region body
PF: predicated region fallthrough
CT: control target
= control target key end

     0   :  { %10 = vsyncpa [#allocation3], 0  ;;  %s1653_s0 = inlined_call_operand.hbm [shape: f32[8,128], index: 0, kind: input, shape index: {}]   ;;  %s1654_s1 = inlined_call_operand.hbm [shape: f32[8,128], index: 1, kind: input, shape index: {}]   ;;  %s1655_s2 = inlined_call_operand.hbm [shape: f32[8,128], index: 2, kind: input, shape index: {}]   ;;  %s1656_s3 = inlined_call_operand.vmem [shape: f32[8,128], index: 3, kind: input, shape index: {}]   ;;  %s1657_s4 = inlined_call_operand.hbm [shape: f32[8,128], index: 4, kind: input, shape index: {}]   ;;  %s1658_s5 = inlined_call_operand.hbm [shape: f32[1280,128], index: 5, kind: output, shape index: {}]  }
   0x1   :  { %11 = vsyncpa [#allocation6], 0 }
   0x2   :  { %12 = vsyncpa [#allocation9], 0 }
   0x3   :  { %13 = vsyncpa [#allocation4], 0 }
   0x4   :  { %15 = vsyncpa [#allocation4 + $0x1], 0  ;;  %s1327_s18 = smov 0   ;;  %s1329_s19 = smov 0  }
   0x5   :  { %s1331_s20 = smov 0   ;;  %s1333_s21 = smov 0  }
   0x6 LB: > { %s1348_s22 = sadd.s32 4294967295, %s1258_s21   ;;  %s861_s23 = sadd.s32 4294967294, %s1258_s21   ;;  %s1258_s21 = sphi %s1333_s21, %s1679_s21   ;;  %s1254_s20 = sphi %s1331_s20, %s1678_s20   ;;  %s1250_s19 = sphi %s1329_s19, %s1677_s19   ;;  %s1246_s18 = sphi %s1327_s18, %s1676_s18  }
   0x7   : > { %s1352_s24 = sadd.s32 1, %s1258_s21   ;;  %s133_s25 = sadd.s32 1, %s1254_s20 }
   0x8   : > { %s130_s26 = ssub.s32 %s1258_s21, %s1352_s24  ;;  %p143_p0 = scmp.ne.s32.totalorder %s1254_s20, %s1250_s19 }
   0x9   : > { %p131_p1 = scmp.eq.s32.totalorder %s130_s26, 0  ;;  %p144_p2 = scmp.eq.s32.totalorder %s1348_s22, 3 }
   0xa   : > { %p149_p3 = scmp.ne.s32.totalorder %s1250_s19, %s1246_s18  ;;  %p150_p4 = scmp.eq.s32.totalorder %s861_s23, 3 }
   0xb   : > { %s1363_s27 = scalar_select %p131_p1, %s1254_s20, %s133_s25  }
   0xc   : > { %p1365_p5 = por %p144_p2, %p143_p0  ;;  %p1369_p6 = por %p150_p4, %p149_p3 }
   0xd   : > { %p862_p7 = scmp.ge.s32.totalorder %s1258_s21, 1  ;;  %p157_p8 = scmp.lt.s32.totalorder %s1258_s21, 5 }
   0xe   : > { %s1662_s28 = scalar_select %p1365_p5, 1, 0 }
   0xf   : > { %s1663_s29 = scalar_select %p1369_p6, 1, 0 }
  0x10   : > { %p1659_p9 = scmp.eq.s32.totalorder %s1348_s22, 0  ;;  %p1376_p10 = pnand %p862_p7, %p157_p8 }
  0x11   : > { %s1284_s6 = smov [#allocation5]   ;;  %s1285_s8 = smov [#allocation2]  }
  0x12   : > { %s1664_s30 = scalar_select %p1376_p10, 1, 0 }
  0x13   : > { %s181_s7 = sshll.u32 %s1284_s6, 4  ;;  %p922_p11 = pneg %p1376_p10  ;;  %s182_s7 = int_to_ptr.vmem [resolvable:$true] %s181_s7 }
  0x14   : > { %s170_s9 = sshll.u32 %s1285_s8, 4  ;;  %s1286_s11 = smov [#allocation7]   ;;  %s1388_s9 = int_to_ptr.vmem [resolvable:$true] %s170_s9 }
  0x15   : > { %p1384_p12 = pnand %p1659_p9, %p922_p11  ;;  %s192_s12 = sshll.u32 %s1286_s11, 4  ;;  %s1390_s12 = int_to_ptr.vmem [resolvable:$true] %s192_s12 }
  0x16   : > { %s1048_s15 = scalar_lea.hbm %s1654_s1, 128 }
  0x17   : > { %p1049_p13 = scmp.ne.s32.totalorder %s1654_s1, %s1048_s15  ;;  %p1400_p0 = pneg %p1384_p12 }
  0x18   : > { %p1055_p3 = scmp.lt.u32.totalorder %s1048_s15, %s1654_s1 }
  0x19   : > { %p1051_p1 = pnand %p1400_p0, %p1049_p13 }
  0x1b   : > { %p1052_p2 = pneg %p1051_p1 }
  0x1d   : > { %p1057_p4 = pnand %p1055_p3, %p1052_p2 }
  0x1f   : > { %1060 = shalt.err (!%p1057_p4)
}
  0x20   : > { %s1061_s6 = scalar_lea.vmem %s182_s7, 128  ;;  %p1069_p9 = scmp.lt.s32.totalorder %s182_s7, %s182_s7 }
  0x21   : > { %p1062_p7 = scmp.ne.s32.totalorder %s182_s7, %s1061_s6  ;;  %p1070_p6 = scmp.lt.s32.totalorder %s1061_s6, %s1061_s6 }
  0x23   : > { %p1064_p8 = pnand %p1062_p7, %p1400_p0  ;;  %p1071_p5 = por %p1070_p6, %p1069_p9 }
  0x25   : > { %p1065_p11 = pneg %p1064_p8 }
  0x27   : > { %p1072_p10 = pnand %p1071_p5, %p1065_p11 }
  0x29   : > { %1075 = shalt.err (!%p1072_p10)
}
  0x2a   : > { %928 = dma.hbm_to_vmem [thread:$0]  (!%p1384_p12), %s1654_s1, 128, %s182_s7, [#allocation6]  }
  0x2b   : > { %s1076_s15 = scalar_lea.hbm %s1653_s0, 128 }
  0x2c   : > { %p1077_p13 = scmp.ne.s32.totalorder %s1653_s0, %s1076_s15  ;;  %p1083_p5 = scmp.lt.u32.totalorder %s1076_s15, %s1653_s0 }
  0x2e   : > { %p1079_p1 = pnand %p1077_p13, %p1400_p0 }
  0x30   : > { %p1080_p6 = pneg %p1079_p1 }
  0x32   : > { %p1085_p9 = pnand %p1083_p5, %p1080_p6 }
  0x34   : > { %1088 = shalt.err (!%p1085_p9)
}
  0x35   : > { %s1089_s7 = scalar_lea.vmem %s1388_s9, 128  ;;  %p1097_p4 = scmp.lt.s32.totalorder %s1388_s9, %s1388_s9 }
  0x36   : > { %p1090_p10 = scmp.ne.s32.totalorder %s1388_s9, %s1089_s7  ;;  %p1098_p7 = scmp.lt.s32.totalorder %s1089_s7, %s1089_s7 }
  0x38   : > { %p1092_p2 = pnand %p1090_p10, %p1400_p0  ;;  %p1099_p8 = por %p1098_p7, %p1097_p4 }
  0x3a   : > { %p1093_p3 = pneg %p1092_p2 }
  0x3c   : > { %p1100_p11 = pnand %p1099_p8, %p1093_p3 }
  0x3e   : > { %1103 = shalt.err (!%p1100_p11)
}
  0x3f   : > { %925 = dma.hbm_to_vmem [thread:$0]  (!%p1384_p12), %s1653_s0, 128, %s1388_s9, [#allocation3]  }
  0x40   : > { %s1104_s14 = scalar_lea.hbm %s1655_s2, 128 }
  0x41   : > { %p1105_p13 = scmp.ne.s32.totalorder %s1655_s2, %s1104_s14  ;;  %p1111_p5 = scmp.lt.u32.totalorder %s1104_s14, %s1655_s2 }
  0x43   : > { %p1107_p1 = pnand %p1105_p13, %p1400_p0 }
  0x45   : > { %p1108_p6 = pneg %p1107_p1 }
  0x47   : > { %p1113_p9 = pnand %p1111_p5, %p1108_p6 }
  0x49   : > { %1116 = shalt.err (!%p1113_p9)
}
  0x4a   : > { %s1117_s9 = scalar_lea.vmem %s1390_s12, 128  ;;  %p1125_p4 = scmp.lt.s32.totalorder %s1390_s12, %s1390_s12 }
  0x4b   : > { %p1118_p10 = scmp.ne.s32.totalorder %s1390_s12, %s1117_s9  ;;  %p1126_p7 = scmp.lt.s32.totalorder %s1117_s9, %s1117_s9 }
  0x4d   : > { %p1120_p2 = pnand %p1118_p10, %p1400_p0  ;;  %p1127_p8 = por %p1126_p7, %p1125_p4 }
  0x4f   : > { %p1121_p3 = pneg %p1120_p2 }
  0x51   : > { %p1128_p11 = pnand %p1127_p8, %p1121_p3 }
  0x53   : > { %1131 = shalt.err (!%p1128_p11)
}
  0x54   : > { %931 = dma.hbm_to_vmem [thread:$0]  (!%p1384_p12), %s1655_s2, 128, %s1390_s12, [#allocation6]  }
  0x55   : > { %s1287_s6 = smov [#allocation8]   ;;  %s1132_s14 = scalar_lea.hbm %s1657_s4, 128 }
  0x56   : > { %s206_s8 = sshll.u32 %s1287_s6, 4  ;;  %p1133_p13 = scmp.ne.s32.totalorder %s1657_s4, %s1132_s14  ;;  %s207_s8 = int_to_ptr.vmem [resolvable:$true] %s206_s8 }
  0x57   : > { %p1139_p5 = scmp.lt.u32.totalorder %s1132_s14, %s1657_s4 }
  0x58   : > { %p1135_p1 = pnand %p1133_p13, %p1400_p0 }
  0x5a   : > { %p1136_p6 = pneg %p1135_p1 }
  0x5c   : > { %p1141_p9 = pnand %p1139_p5, %p1136_p6 }
  0x5e   : > { %1144 = shalt.err (!%p1141_p9)
}
  0x5f   : > { %s1145_s12 = scalar_lea.vmem %s207_s8, 128  ;;  %p1153_p4 = scmp.lt.s32.totalorder %s207_s8, %s207_s8 }
  0x60   : > { %p1146_p10 = scmp.ne.s32.totalorder %s207_s8, %s1145_s12  ;;  %p1154_p7 = scmp.lt.s32.totalorder %s1145_s12, %s1145_s12 }
  0x62   : > { %p1148_p2 = pnand %p1146_p10, %p1400_p0  ;;  %p1155_p8 = por %p1154_p7, %p1153_p4 }
  0x64   : > { %p1149_p3 = pneg %p1148_p2 }
  0x66   : > { %p1156_p11 = pnand %p1155_p8, %p1149_p3 }
  0x68   : > { %1159 = shalt.err (!%p1156_p11)
}
  0x69   : > { %934 = dma.hbm_to_vmem [thread:$0]  (!%p1384_p12), %s1657_s4, 128, %s207_s8, [#allocation9]  }
  0x6a   : > { %p1667_p13 = scmp.ne.s32.totalorder %s1664_s30, 0 }
  0x6b   : > { %p1668_p1 = scmp.eq.s32.totalorder (!%p1667_p13), %s1348_s22, 0 }
  0x6c   : > { %219 = sbr.rel (%p1667_p13) target bundleno = 336 (0x150), region = 40 }
  0x73   : > { %1229 = dma.done.wait (%p1668_p1), [#allocation3], 128   ;;  %p1669_p0 = pmov %p1668_p1 }
  0x75   : > { %1231 = vsyncadd (%p1669_p0), [#allocation3], 4294967168  ;;  %p1670_p6 = pmov %p1669_p0 }
  0x76   : > { %p1671_p5 = pmov %p1669_p0 }
  0x77   : > { %1233 = dma.done.wait (%p1670_p6), [#allocation6], 256  }
  0x78   : > { %1235 = vsyncadd (%p1671_p5), [#allocation6], 4294967040  ;;  %p1672_p9 = pmov %p1669_p0 }
  0x79   : > { %p1673_p12 = pmov %p1669_p0 }
  0x7a   : > { %1237 = dma.done.wait (%p1672_p9), [#allocation9], 128  }
  0x7b   : > { %1239 = vsyncadd (%p1673_p12), [#allocation9], 4294967168  ;;  %s259_s30 = smul.u32 320, %s1348_s22  ;;  %v1503_v1 = vld [vmem:[%s1656_s3] sm:$0xff]  ;;  %v1505_v2 = vld [vmem:[#allocation8] sm:$0xff]  ;;  %s251_s8 = sand.u32 1, %s1250_s19  }
  0x7c   : > { %v263_v3 = vld [vmem:[#allocation5] sm:$0xff]  ;;  %v266_v4 = vld [vmem:[#allocation2] sm:$0xff]  ;;  %v1288_v18 = vmov 683565275   ;;  %v1289_v20 = vmov 2475754826  }
  0x7d   : > { %s1495_s10 = scvt.s32.f32 %s259_s30  ;;  %v1290_v22 = vmov 2131351028   ;;  %v1291_v24 = vmov 2102212464   ;;  %v1292_v26 = vmov 920167782  }
  0x7e   : > { %v1293_v33 = vmov 1326507024   ;;  %s895_s11 = smul.u32 320, %s251_s8  ;;  %s1268_s14 = smov 1  }
  0x7f   : > { %s261_s23 = smul.f32 4.0, %s1495_s10 }
  0x80   : > { %s1547_s13 = scalar_lea.vmem [#allocation10], %s895_s11 }
  0x81   : > { %v264_v0 = vstv %s261_s23 }
  0x82   : > { %v265_v5 = vadd.f32 %v264_v0, %v263_v3 }
  0x84   : > { %v1507_v6 = vmul.f32 %v266_v4, %v265_v5 }
  0x86   : > { %v271_v7 = vand.u32 2139095040, %v1507_v6  ;;  %v268_v9 = vand.u32 2147483647, %v1507_v6  ;;  %vm270_vm7 = vcmp.lt.s32.totalorder %v1507_v6, 0  ;;  %vm360_vm15 = vweird.f32 %v1507_v6 }
  0x88   : > { %v272_v8 = vshrl.u32 %v271_v7, 23  ;;  %v275_v12 = vand.u32 8388607, %v268_v9  ;;  %vm269_vm8 = vcmp.le.f32.partialorder %v268_v9, 0.7853982  ;;  %v1541_v9 = vld [vmem:[#allocation7] sm:$0xff] }
  0x8a   : > { %v872_v10 = vadd.s32 4294967169, %v272_v8  ;;  %v276_v15 = vor.u32 8388608, %v275_v12 }
  0x8c   : > { %v278_v11 = vadd.s32 1, %v872_v10  ;;  %v316_v35 = vshll.u32 %v276_v15, 8 }
  0x8e   : > { %vm279_vm0 = vcmp.gt.s32.totalorder %v278_v11, 0 }
  0x8f   : > { %v280_v13 = vsel %vm279_vm0, %v278_v11, 0  ;;  %vm258_vm0 = vcmp.gt.f32.partialorder %v1541_v9, 0.5 }
  0x90   : > { %v282_v14 = vand.u32 31, %v280_v13  ;;  %v281_v16 = vshrl.u32 %v280_v13, 5 }
  0x92   : > { %v283_v17 = vsub.s32 32, %v282_v14  ;;  %v285_v19 = vshll.u32 %v1288_v18, %v282_v14  ;;  %v288_v21 = vshll.u32 %v1289_v20, %v282_v14  ;;  %v291_v23 = vshll.u32 %v1290_v22, %v282_v14 }
  0x93   : > { %v294_v25 = vshll.u32 %v1291_v24, %v282_v14  ;;  %v297_v27 = vshll.u32 %v1292_v26, %v282_v14  ;;  %vm300_vm1 = vcmp.lt.s32.totalorder %v281_v16, 1  ;;  %vm303_vm2 = vcmp.lt.s32.totalorder %v281_v16, 4 }
  0x94   : > { %v284_v28 = vshrl.u32 %v1288_v18, %v283_v17  ;;  %v286_v29 = vshrl.u32 %v1289_v20, %v283_v17  ;;  %v289_v30 = vshrl.u32 %v1290_v22, %v283_v17  ;;  %v292_v31 = vshrl.u32 %v1291_v24, %v283_v17 }
  0x95   : > { %v295_v32 = vshrl.u32 %v1292_v26, %v283_v17  ;;  %v298_v34 = vshrl.u32 %v1293_v33, %v283_v17  ;;  %vm301_vm3 = vcmp.lt.s32.totalorder %v281_v16, 2  ;;  %vm302_vm4 = vcmp.lt.s32.totalorder %v281_v16, 3 }
  0x96   : > { %v287_v36 = vor.u32 %v286_v29, %v285_v19  ;;  %v290_v37 = vor.u32 %v289_v30, %v288_v21  ;;  %v293_v38 = vor.u32 %v292_v31, %v291_v23 }
  0x97   : > { %v296_v39 = vor.u32 %v295_v32, %v294_v25  ;;  %v299_v40 = vor.u32 %v298_v34, %v297_v27 }
  0x98   : > { %v304_v41 = vsel %vm300_vm1, %v284_v28, %v287_v36  ;;  %v305_v42 = vsel %vm303_vm2, %v293_v38, 2102212464  ;;  %v308_v43 = vsel %vm300_vm1, %v287_v36, %v290_v37  ;;  %v312_v44 = vsel %vm300_vm1, %v290_v37, %v293_v38 }
  0x99   : > { %v306_v45 = vsel %vm302_vm4, %v290_v37, %v305_v42  ;;  %v309_v46 = vsel %vm303_vm2, %v296_v39, 920167782  ;;  %v313_v47 = vsel %vm303_vm2, %v299_v40, 1326507024 }
  0x9a   : > { %v310_v48 = vsel %vm302_vm4, %v293_v38, %v309_v46  ;;  %v314_v49 = vsel %vm302_vm4, %v296_v39, %v313_v47  ;;  %v307_v50 = vsel %vm301_vm3, %v304_v41, %v306_v45 }
  0x9b   : > { %v311_v51 = vsel %vm301_vm3, %v308_v43, %v310_v48  ;;  %v315_v52 = vsel %vm301_vm3, %v312_v44, %v314_v49  ;;  %v323_v57 = vmul.u32 %v316_v35, %v307_v50 }
  0x9c   : > { %v1524_v53 = vmul.u32.u64.low %v316_v35, %v315_v52  ;;  %v1525_v54 = vmul.u32.u64.high %v316_v35, %v315_v52, %v1524_v53  ;;  %v1527_v55 = vmul.u32.u64.low %v316_v35, %v311_v51  ;;  %v1528_v56 = vmul.u32.u64.high %v316_v35, %v311_v51, %v1527_v55 }
  0x9e   : > { %vm325_vm5 = vc.u32 %v1525_v54, %v1527_v55  ;;  %v326_v58 = vadd.s32 1, %v1528_v56  ;;  %v324_v8 = vadd.s32 %v1527_v55, %v1525_v54 }
  0xa0   : > { %v327_v59 = vsel %vm325_vm5, %v326_v58, %v1528_v56 }
  0xa1   : > { %v328_v60 = vadd.s32 %v327_v59, %v323_v57 }
  0xa3   : > { %v329_v61 = vadd.s32 536870912, %v328_v60 }
  0xa5   : > { %v330_v62 = vshrl.u32 %v329_v61, 30 }
  0xa7   : > { %v331_v63 = vshll.u32 %v330_v62, 30  ;;  %v354_v25 = vsub.s32 4, %v330_v62 }
  0xa9   : > { %v332_v0 = vsub.s32 %v328_v60, %v331_v63  ;;  %v355_v29 = vsel %vm270_vm7, %v354_v25, %v330_v62 }
  0xaa   : > { %v357_v32 = vsel %vm269_vm8, 0, %v355_v29 }
  0xab   : > { %v334_v3 = vsub.s32 0, %v332_v0  ;;  %v361_v34 = vadd.s32 3, %v357_v32  ;;  %v465_v36 = vand.u32 3, %v357_v32 }
  0xad   : > { %v873_v4 = vmin.u32 %v334_v3, %v332_v0  ;;  %v362_v35 = vand.u32 3, %v361_v34  ;;  %vm470_vm10 = vcmp.eq.s32.totalorder %v465_v36, 2  ;;  %vm467_vm12 = vcmp.eq.s32.totalorder %v465_v36, 0 }
  0xae   : > { %vm466_vm14 = vcmp.lt.s32.totalorder %v465_v36, 2 }
  0xaf   : > { %v336_v5 = vclz %v873_v4  ;;  %vm367_vm9 = vcmp.eq.s32.totalorder %v362_v35, 2  ;;  %vm364_vm11 = vcmp.eq.s32.totalorder %v362_v35, 0  ;;  %vm363_vm13 = vcmp.lt.s32.totalorder %v362_v35, 2 }
  0xb1   : > { %v874_v7 = vadd.s32 4294967294, %v336_v5 }
  0xb3   : > { %vm875_vm6 = vcmp.lt.s32.totalorder %v874_v7, 0 }
  0xb4   : > { %v339_v10 = vsel %vm875_vm6, 0, %v874_v7 }
  0xb5   : > { %v340_v11 = vsub.s32 32, %v339_v10  ;;  %v341_v12 = vshll.u32 %v332_v0, %v339_v10  ;;  %v344_v13 = vsub.s32 4294967266, %v339_v10 }
  0xb7   : > { %v342_v14 = vshrl.u32 %v324_v8, %v340_v11  ;;  %v345_v15 = vadd.s32 127, %v344_v13 }
  0xb9   : > { %v343_v16 = vor.u32 %v342_v14, %v341_v12  ;;  %v346_v17 = vshll.u32 %v345_v15, 23 }
  0xbb   : > { %v347_v19 = vor.u32 4788187, %v346_v17  ;;  %v350_v21 = vcvt.s32.f32 %v343_v16 }
  0xbd   : > { %v348_v23 = vand.u32 2147483647, %v347_v19 }
  0xbf   : > { %v351_v27 = vmul.f32 %v350_v21, %v348_v23 }
  0xc1   : > { %v352_v28 = vxor.u32 2147483648, %v351_v27 }
  0xc3   : > { %v353_v30 = vsel %vm270_vm7, %v352_v28, %v351_v27 }
  0xc4   : > { %v356_v31 = vsel %vm269_vm8, %v1507_v6, %v353_v30 }
  0xc5   : > { %1040 = vcosq.f32 %v356_v31 }
  0xc6   : > { %1042 = vsinq.f32 %v356_v31 }
  0xcf   : > { %v1041_v37 = vpop.eup %1040 }
  0xd0   : > { %v1043_v38 = vpop.eup %1042  ;;  %v368_v39 = vxor.u32 2147483648, %v1041_v37 }
  0xd1   : > { %v365_v40 = vxor.u32 2147483648, %v1043_v38 }
  0xd2   : > { %v369_v41 = vsel %vm367_vm9, %v368_v39, %v1043_v38  ;;  %v472_v42 = vsel %vm470_vm10, %v368_v39, %v1043_v38 }
  0xd3   : > { %v366_v43 = vsel %vm364_vm11, %v1041_v37, %v365_v40  ;;  %v469_v44 = vsel %vm467_vm12, %v1041_v37, %v365_v40 }
  0xd4   : > { %v370_v45 = vsel %vm363_vm13, %v366_v43, %v369_v41  ;;  %v473_v46 = vsel %vm466_vm14, %v469_v44, %v472_v42 }
  0xd5   : > { %v371_v47 = vsel %vm360_vm15, nan, %v370_v45   ;;  %v474_v48 = vsel %vm360_vm15, nan, %v473_v46  }
  0xd6   : > { %v475_v49 = vsel %vm258_vm0, %v474_v48, %v371_v47  ;;  %v1260_v50 = vmov %v474_v48   ;;  %v1264_v51 = vmov %v371_v47  }
  0xd7   : > { %476 = vst [vmem:[%s1547_s13] sm:$0xff] %v475_v49 }
  0xd8 LB: >> { %v485_v6 = vmul.f32 %v1266_v51, %v1505_v2  ;;  %v486_v52 = vmul.f32 %v1262_v50, %v1503_v1  ;;  %v488_v53 = vmul.f32 %v1262_v50, %v1505_v2  ;;  %v489_v54 = vmul.f32 %v1266_v51, %v1503_v1  ;;  %s880_s15 = sshll.u32 %s1270_s14, 3  ;;  %s482_s14 = sadd.s32 1, %s1270_s14   ;;  %s1270_s14 = sphi %s1268_s14, %s482_s14   ;;  %v1266_v51 = vphi %v1264_v51, %v487_v51   ;;  %v1262_v50 = vphi %v1260_v50, %v490_v50  }
  0xd9   : >> { %s493_s16 = scalar_lea.vmem %s1547_s13, %s880_s15 [#allocation10]  ;;  %p479_p10 = scmp.ge.s32.totalorder %s482_s14, 32  }
  0xda   : >> { %v487_v51 = vadd.f32 %v486_v52, %v485_v6   ;;  %v490_v50 = vsub.f32 %v488_v53, %v489_v54   ;;  %s495_s17 = sadd.f32 (%p479_p10), 1024.0, %s261_s23  ;;  %v496_v56 = vld [vmem:[#allocation5] sm:$0xff] (%p479_p10)  ;;  %v499_v58 = vld [vmem:[#allocation2] sm:$0xff] (%p479_p10)  ;;  %s1280_s25 = smov (%p479_p10), 1  }
  0xdb   : > { %481 = sbr.rel (!%p479_p10) target bundleno = 216 (0xd8), region = 105 }
  0xdc   : >> { %v492_v55 = vsel %vm258_vm0, %v490_v50, %v487_v51  ;;  %v497_v57 = vstv (%p479_p10), %s495_s17 }
  0xdd   : >> { %494 = vst [vmem:[%s493_s16] sm:$0xff] %v492_v55  ;;  %v498_v59 = vadd.f32 (%p479_p10), %v497_v57, %v496_v56 }
  0xdf   : > { %v1559_v60 = vmul.f32 (%p479_p10), %v499_v58, %v498_v59 }
  0xe1   : > { %v504_v61 = vand.u32 (%p479_p10), 2139095040, %v1559_v60  ;;  %v501_v63 = vand.u32 (%p479_p10), 2147483647, %v1559_v60  ;;  %vm503_vm8 = vcmp.lt.s32.totalorder (%p479_p10), %v1559_v60, 0 }
  0xe3   : > { %v505_v62 = vshrl.u32 %v504_v61, 23  ;;  %v508_v4 = vand.u32 8388607, %v501_v63  ;;  %vm502_vm9 = vcmp.le.f32.partialorder %v501_v63, 0.7853982 }
  0xe5   : > { %v881_v0 = vadd.s32 4294967169, %v505_v62  ;;  %v509_v8 = vor.u32 8388608, %v508_v4 }
  0xe7   : > { %v511_v3 = vadd.s32 1, %v881_v0  ;;  %v549_v28 = vshll.u32 %v509_v8, 8 }
  0xe9   : > { %vm512_vm1 = vcmp.gt.s32.totalorder %v511_v3, 0 }
  0xea   : > { %v513_v5 = vsel %vm512_vm1, %v511_v3, 0  ;;  %vm593_vm1 = vweird.f32 %v1559_v60 }
  0xeb   : > { %v515_v7 = vand.u32 31, %v513_v5  ;;  %v514_v10 = vshrl.u32 %v513_v5, 5 }
  0xed   : > { %v516_v11 = vsub.s32 32, %v515_v7  ;;  %v518_v12 = vshll.u32 %v1288_v18, %v515_v7  ;;  %v521_v13 = vshll.u32 %v1289_v20, %v515_v7  ;;  %v524_v14 = vshll.u32 %v1290_v22, %v515_v7 }
  0xee   : > { %v527_v15 = vshll.u32 %v1291_v24, %v515_v7  ;;  %v530_v16 = vshll.u32 %v1292_v26, %v515_v7  ;;  %vm533_vm2 = vcmp.lt.s32.totalorder %v514_v10, 1  ;;  %vm536_vm3 = vcmp.lt.s32.totalorder %v514_v10, 4 }
  0xef   : > { %v517_v17 = vshrl.u32 %v1288_v18, %v516_v11  ;;  %v519_v19 = vshrl.u32 %v1289_v20, %v516_v11  ;;  %v522_v21 = vshrl.u32 %v1290_v22, %v516_v11  ;;  %v525_v23 = vshrl.u32 %v1291_v24, %v516_v11 }
  0xf0   : > { %v528_v25 = vshrl.u32 %v1292_v26, %v516_v11  ;;  %v531_v27 = vshrl.u32 %v1293_v33, %v516_v11  ;;  %vm534_vm4 = vcmp.lt.s32.totalorder %v514_v10, 2  ;;  %vm535_vm5 = vcmp.lt.s32.totalorder %v514_v10, 3 }
  0xf1   : > { %v520_v29 = vor.u32 %v519_v19, %v518_v12  ;;  %v523_v30 = vor.u32 %v522_v21, %v521_v13  ;;  %v526_v31 = vor.u32 %v525_v23, %v524_v14 }
  0xf2   : > { %v529_v32 = vor.u32 %v528_v25, %v527_v15  ;;  %v532_v34 = vor.u32 %v531_v27, %v530_v16 }
  0xf3   : > { %v537_v18 = vsel %vm533_vm2, %v517_v17, %v520_v29  ;;  %v538_v20 = vsel %vm536_vm3, %v526_v31, 2102212464  ;;  %v541_v35 = vsel %vm533_vm2, %v520_v29, %v523_v30  ;;  %v545_v22 = vsel %vm533_vm2, %v523_v30, %v526_v31 }
  0xf4   : > { %v539_v36 = vsel %vm535_vm5, %v523_v30, %v538_v20  ;;  %v542_v24 = vsel %vm536_vm3, %v529_v32, 920167782  ;;  %v546_v37 = vsel %vm536_vm3, %v532_v34, 1326507024 }
  0xf5   : > { %v543_v26 = vsel %vm535_vm5, %v526_v31, %v542_v24  ;;  %v547_v38 = vsel %vm535_vm5, %v529_v32, %v546_v37  ;;  %v540_v33 = vsel %vm534_vm4, %v537_v18, %v539_v36 }
  0xf6   : > { %v544_v39 = vsel %vm534_vm4, %v541_v35, %v543_v26  ;;  %v548_v40 = vsel %vm534_vm4, %v545_v22, %v547_v38  ;;  %v556_v45 = vmul.u32 %v549_v28, %v540_v33 }
  0xf7   : > { %v1576_v41 = vmul.u32.u64.low %v549_v28, %v548_v40  ;;  %v1577_v42 = vmul.u32.u64.high %v549_v28, %v548_v40, %v1576_v41  ;;  %v1579_v43 = vmul.u32.u64.low %v549_v28, %v544_v39  ;;  %v1580_v44 = vmul.u32.u64.high %v549_v28, %v544_v39, %v1579_v43 }
  0xf9   : > { %vm558_vm6 = vc.u32 %v1577_v42, %v1579_v43  ;;  %v559_v46 = vadd.s32 1, %v1580_v44  ;;  %v557_v56 = vadd.s32 %v1579_v43, %v1577_v42 }
  0xfb   : > { %v560_v47 = vsel %vm558_vm6, %v559_v46, %v1580_v44 }
  0xfc   : > { %v561_v48 = vadd.s32 %v560_v47, %v556_v45 }
  0xfe   : > { %v562_v49 = vadd.s32 536870912, %v561_v48 }
 0x100   : > { %v563_v50 = vshrl.u32 %v562_v49, 30 }
 0x102   : > { %v564_v51 = vshll.u32 %v563_v50, 30  ;;  %v587_v10 = vsub.s32 4, %v563_v50 }
 0x104   : > { %v565_v6 = vsub.s32 %v561_v48, %v564_v51  ;;  %v588_v13 = vsel %vm503_vm8, %v587_v10, %v563_v50 }
 0x105   : > { %v590_v16 = vsel %vm502_vm9, 0, %v588_v13 }
 0x106   : > { %v567_v52 = vsub.s32 0, %v565_v6  ;;  %v594_v17 = vadd.s32 3, %v590_v16  ;;  %v698_v21 = vand.u32 3, %v590_v16 }
 0x108   : > { %v882_v53 = vmin.u32 %v567_v52, %v565_v6  ;;  %v595_v19 = vand.u32 3, %v594_v17  ;;  %vm703_vm11 = vcmp.eq.s32.totalorder %v698_v21, 2  ;;  %vm700_vm13 = vcmp.eq.s32.totalorder %v698_v21, 0 }
 0x109   : > { %vm699_vm15 = vcmp.lt.s32.totalorder %v698_v21, 2 }
 0x10a   : > { %v569_v54 = vclz %v882_v53  ;;  %vm600_vm10 = vcmp.eq.s32.totalorder %v595_v19, 2  ;;  %vm597_vm12 = vcmp.eq.s32.totalorder %v595_v19, 0  ;;  %vm596_vm14 = vcmp.lt.s32.totalorder %v595_v19, 2 }
 0x10c   : > { %v883_v55 = vadd.s32 4294967294, %v569_v54 }
 0x10e   : > { %vm884_vm7 = vcmp.lt.s32.totalorder %v883_v55, 0 }
 0x10f   : > { %v572_v57 = vsel %vm884_vm7, 0, %v883_v55 }
 0x110   : > { %v573_v58 = vsub.s32 32, %v572_v57  ;;  %v574_v59 = vshll.u32 %v565_v6, %v572_v57  ;;  %v577_v61 = vsub.s32 4294967266, %v572_v57 }
 0x112   : > { %v575_v62 = vshrl.u32 %v557_v56, %v573_v58  ;;  %v578_v0 = vadd.s32 127, %v577_v61 }
 0x114   : > { %v576_v3 = vor.u32 %v575_v62, %v574_v59  ;;  %v579_v4 = vshll.u32 %v578_v0, 23 }
 0x116   : > { %v580_v5 = vor.u32 4788187, %v579_v4  ;;  %v583_v7 = vcvt.s32.f32 %v576_v3 }
 0x118   : > { %v581_v8 = vand.u32 2147483647, %v580_v5 }
 0x11a   : > { %v584_v11 = vmul.f32 %v583_v7, %v581_v8 }
 0x11c   : > { %v585_v12 = vxor.u32 2147483648, %v584_v11 }
 0x11e   : > { %v586_v14 = vsel %vm503_vm8, %v585_v12, %v584_v11 }
 0x11f   : > { %v589_v15 = vsel %vm502_vm9, %v1559_v60, %v586_v14 }
 0x120   : > { %1044 = vcosq.f32 %v589_v15 }
 0x121   : > { %1046 = vsinq.f32 %v589_v15 }
 0x12a   : > { %v1045_v23 = vpop.eup %1044 }
 0x12b   : > { %v1047_v25 = vpop.eup %1046  ;;  %v601_v27 = vxor.u32 2147483648, %v1045_v23 }
 0x12c   : > { %v598_v63 = vxor.u32 2147483648, %v1047_v25 }
 0x12d   : > { %v602_v28 = vsel %vm600_vm10, %v601_v27, %v1047_v25  ;;  %v705_v29 = vsel %vm703_vm11, %v601_v27, %v1047_v25 }
 0x12e   : > { %v599_v30 = vsel %vm597_vm12, %v1045_v23, %v598_v63  ;;  %v702_v31 = vsel %vm700_vm13, %v1045_v23, %v598_v63 }
 0x12f   : > { %v603_v32 = vsel %vm596_vm14, %v599_v30, %v602_v28  ;;  %v706_v34 = vsel %vm699_vm15, %v702_v31, %v705_v29 }
 0x130   : > { %v604_v18 = vsel %vm593_vm1, nan, %v603_v32   ;;  %v707_v20 = vsel %vm593_vm1, nan, %v706_v34  }
 0x131   : > { %v708_v35 = vsel %vm258_vm0, %v707_v20, %v604_v18  ;;  %v1272_v22 = vmov %v707_v20   ;;  %v1276_v36 = vmov %v604_v18  }
 0x132   : > { %709 = vst [vmem:[%s1547_s13 + $0x100] sm:$0xff] %v708_v35 }
 0x133 LB: >> { %v718_v60 = vmul.f32 %v1278_v36, %v1505_v2  ;;  %v719_v24 = vmul.f32 %v1274_v22, %v1503_v1  ;;  %v721_v37 = vmul.f32 %v1274_v22, %v1505_v2  ;;  %v722_v26 = vmul.f32 %v1278_v36, %v1503_v1  ;;  %s889_s12 = sshll.u32 %s1282_s25, 3  ;;  %s715_s25 = sadd.s32 1, %s1282_s25   ;;  %s1282_s25 = sphi %s1280_s25, %s715_s25   ;;  %v1278_v36 = vphi %v1276_v36, %v720_v36   ;;  %v1274_v22 = vphi %v1272_v22, %v723_v22  }
 0x134   : >> { %s778_s9 = scalar_lea.vmem %s1547_s13, %s889_s12 [#allocation10]  ;;  %p712_p2 = scmp.ge.s32.totalorder %s715_s25, 8  }
 0x135   : >> { %v720_v36 = vadd.f32 %v719_v24, %v718_v60   ;;  %v723_v22 = vsub.f32 %v721_v37, %v722_v26   ;;  %s894_s26 = smul.u32 (%p712_p2), 5120, %s1348_s22  ;;  %s743_s30 = sshll.u32 (%p712_p2), %s1547_s13, 4  ;;  %s1608_s30 = int_to_ptr.vmem [resolvable:$true] %s743_s30 }
 0x136   : > { %714 = sbr.rel (!%p712_p2) target bundleno = 307 (0x133), region = 116  ;;  %s1612_s6 = scalar_lea.sflag (%p712_p2), [#allocation4], %s251_s8 }
 0x137   : >> { %v726_v38 = vsel %vm258_vm0, %v723_v22, %v720_v36  ;;  %s1606_s7 = scalar_lea.hbm (%p712_p2), %s1658_s5, %s894_s26  ;;  %s1160_s11 = scalar_lea.vmem (%p712_p2), %s1608_s30, 5120 }
 0x138   : >> { %890 = vst [vmem:[%s778_s9 + $0x100] sm:$0xff] %v726_v38  ;;  %p1161_p3 = scmp.ne.s32.totalorder (%p712_p2), %s1608_s30, %s1160_s11  ;;  %p1674_p4 = scmp.ne.s32.totalorder (%p712_p2), %s1662_s28, 0 }
 0x139   : > { %s1294_s22 = smov (%p712_p2), [#allocation10]  }
 0x13a   : > { %p1162_p7 = pnand (%p712_p2), %p1161_p3, %p1674_p4  ;;  %s1164_s13 = sshll.u32 (%p712_p2), %s1294_s22, 4  ;;  %s1165_s13 = int_to_ptr.vmem [resolvable:$false] %s1164_s13 }
 0x13b   : > { %s1166_s14 = scalar_lea.vmem (%p712_p2), %s1165_s13, 10240  ;;  %p1167_p11 = scmp.lt.s32.totalorder (%p712_p2), %s1608_s30, %s1165_s13 }
 0x13c   : > { %p1163_p8 = pneg (%p712_p2), %p1162_p7  ;;  %p1168_p13 = scmp.lt.s32.totalorder (%p712_p2), %s1166_s14, %s1160_s11 }
 0x13e   : > { %p1169_p1 = por %p1168_p13, %p1167_p11 }
 0x140   : > { %p1170_p0 = pnand %p1169_p1, %p1163_p8 }
 0x142   : > { %1173 = shalt.err (!%p1170_p0)
}
 0x143   : > { %s1174_s8 = scalar_lea.hbm %s1606_s7, 5120  ;;  %s1178_s17 = scalar_lea.hbm %s1658_s5, 20480 }
 0x144   : > { %p1175_p6 = scmp.ne.s32.totalorder %s1606_s7, %s1174_s8  ;;  %p1179_p12 = scmp.lt.u32.totalorder %s1606_s7, %s1658_s5 }
 0x145   : > { %p1180_p10 = scmp.lt.u32.totalorder %s1178_s17, %s1174_s8  ;;  %p1182_p3 = scmp.lt.u32.totalorder %s1174_s8, %s1606_s7 }
 0x146   : > { %p1176_p5 = pnand %p1175_p6, %p1674_p4 }
 0x147   : > { %p1181_p2 = por %p1180_p10, %p1179_p12 }
 0x148   : > { %p1177_p9 = pneg %p1176_p5 }
 0x149   : > { %p1183_p7 = por %p1182_p3, %p1181_p2 }
 0x14b   : > { %p1184_p8 = pnand %p1183_p7, %p1177_p9 }
 0x14d   : > { %1187 = shalt.err (!%p1184_p8)
}
 0x14e   : > { %s1295_s9 = smov 128   ;;  %s1296_s26 = smov 8  }
 0x14f   : > { %920 = dma.vmem_to_hbm [thread:$0]  (%p1674_p4), %s1608_s30, 5120, %s1606_s7, %s1612_s6, %s1295_s9, %s1295_s9, %s1296_s26  }
 0x150 PF: > { %p947_p11 = scmp.ge.s32.totalorder %s1258_s21, 2  ;;  %s758_s10 = sand.u32 1, %s1246_s18  }
 0x151   : > { %p1675_p13 = scmp.ne.s32.totalorder %s1663_s29, 0  ;;  %s759_s23 = scalar_lea.sflag [#allocation4], %s758_s10 }
 0x153   : > { %p936_p1 = pnand %p947_p11, %p1675_p13 }
 0x155   : > { %1241 = dma.done.wait (!%p936_p1), %s759_s23, 5120  }
 0x156   : > { %1243 = vsyncadd (!%p936_p1), %s759_s23, 4294962176  ;;  %p18_p0 = scmp.ge.s32.totalorder %s1352_s24, 6   ;;  %s1676_s18 = smov %s1250_s19 }
 0x157   : > { %s1677_s19 = smov %s1254_s20  ;;  %s1678_s20 = smov %s1363_s27 }
 0x158   : > { %s1679_s21 = smov %s1352_s24  ;;  %20 = sbr.rel (!%p18_p0) target bundleno = 6 (0x6), region = 127 }
 0x15f   :  { %764 = vsyncpa [#allocation3], 1 }
 0x160   :  { %766 = vsyncpa [#allocation3 + $0x1], 1 }
 0x161   :  { %767 = vsyncpa [#allocation6], 1 }
 0x162   :  { %768 = vsyncpa [#allocation9], 1 }
 0x163   :  { %769 = vsyncpa [#allocation4], 1 }
 0x164   :  { %771 = vsyncpa [#allocation4 + $0x1], 1 }

</bundles_post_ra>
